<compile_context>
chip_gen: v6e
topology: v6e:2x2x1
jax: 0.10.0
libtpu: 0.0.40
codegen_flags: <defaults>
</compile_context>

<pallas_src>
import jax
import jax.numpy as jnp
from jax import lax
from jax.experimental import pallas as pl
from jax.experimental.pallas import tpu as pltpu


def _round_up(x, m):
    return ((x + m - 1) // m) * m


def _vmem_limit_bytes():
    """Generation-aware VMEM budget with 16 MiB headroom (guarded query)."""
    cap = 64 * 1024 * 1024
    try:
        cap = int(pltpu.get_tpu_info().vmem_capacity_bytes)
    except Exception:
        pass
    return max(32 * 1024 * 1024, cap - 16 * 1024 * 1024)


# ---------------------------------------------------------------------------
# Pass 1: stream x tiles, prepool matmul (no bias), one-hot scatter-add into
# per-core partial (bp, dp) sums + (bp, 1) counts.
# ---------------------------------------------------------------------------
def _reduce_kernel(bidx_ref, x_ref, wpre_ref, sums_ref, counts_ref):
    bp = sums_ref.shape[1]

    @pl.when(pl.program_id(1) == 0)
    def _init():
        sums_ref[...] = jnp.zeros_like(sums_ref)
        counts_ref[...] = jnp.zeros_like(counts_ref)

    # prepool Linear without bias (bias is deferred to finalize): bf16 x bf16
    # operands, f32 accumulation on the MXU.
    h = jnp.dot(x_ref[...], wpre_ref[...],
                preferred_element_type=jnp.float32)                      # (tn, dp)

    # One-hot segment membership (bp, tn); 0/1 values are exact in bf16.
    tn = x_ref.shape[0]
    hits = lax.broadcasted_iota(jnp.int32, (bp, tn), 0) == bidx_ref[...]
    m_bn = hits.astype(jnp.bfloat16)

    # Segment scatter-add as a matmul; accumulate into the resident output.
    sums_ref[...] += jnp.dot(m_bn, h.astype(jnp.bfloat16),
                             preferred_element_type=jnp.float32)[None]   # (1,bp,dp)
    counts_ref[...] += jnp.sum(hits.astype(jnp.float32), axis=-1,
                               keepdims=True)[None]                      # (1,bp,1)


# ---------------------------------------------------------------------------
# Finalize: combine per-core partials, deferred prepool bias, mean, proj.
# Runs once; emits pooled in bf16 so the gather pass needs no per-tile cast.
# ---------------------------------------------------------------------------
def _finalize_kernel(sums_ref, counts_ref, bpre_ref, wproj_ref, bproj_ref,
                     pooled_ref):
    sums = jnp.sum(sums_ref[...], axis=0)                                # (bp, dp)
    counts = jnp.sum(counts_ref[...], axis=0)                            # (bp, 1)
    # Deferred bias: sum_i (x_i W + b) = sums + counts*b; empty segments -> 0.
    xmean = ((sums + counts * bpre_ref[...]) /
             jnp.maximum(counts, 1.0)).astype(jnp.bfloat16)
    proj = jnp.dot(xmean, wproj_ref[...],
                   preferred_element_type=jnp.float32) + bproj_ref[...]
    pooled_ref[...] = proj.astype(pooled_ref.dtype)


# ---------------------------------------------------------------------------
# Pass 2: gather pooled segment vectors back to entities via a transposed
# one-hot matmul (the lane-sparse (N, B) one-hot is never materialized).
# ---------------------------------------------------------------------------
def _gather_kernel(bidx_ref, pooled_ref, out_ref):
    bp = pooled_ref.shape[0]
    tn = out_ref.shape[0]
    m_bn = (lax.broadcasted_iota(jnp.int32, (bp, tn), 0) == bidx_ref[...]
            ).astype(jnp.bfloat16)                                       # (bp, tn)
    out = lax.dot_general(m_bn, pooled_ref[...],
                          dimension_numbers=(((0,), (0,)), ((), ())),
                          preferred_element_type=jnp.float32)            # (tn, dp)
    out_ref[...] = out.astype(out_ref.dtype)


def pool_forward(x, batch_index, params, num_segments, *, tile_n=2048):
    """Pool forward pass: reduce (2-core split) + finalize + gather."""
    n, d = x.shape
    wpre, bpre, wproj, bproj = params       # weights stored (in, out)

    dp = _round_up(d, 128)                  # lane-dense feature dim
    bp = _round_up(max(num_segments, 1), 8)  # sublane-aligned segment dim
    vmem_limit = _vmem_limit_bytes()

    # Tile rows: multiple of 128 (lane-aligned batch_index blocks, bf16-pack
    # friendly), capped by a VMEM budget for the double-buffered x tile.
    tn = min(_round_up(tile_n, 128), _round_up(n, 128))
    max_tn_by_vmem = max(128, ((vmem_limit // 2) // (2 * 2 * dp)) // 128 * 128)
    tn = max(128, min(tn, max_tn_by_vmem))

    n_tiles = -(-n // tn)                   # cdiv
    num_cores = 2 if n_tiles >= 2 else 1    # outer "parallel" axis (v7x: 2 TCs)
    tiles_per_core = -(-n_tiles // num_cores)
    np_ = num_cores * tiles_per_core * tn

    # --- prepare inputs (skip pads/copies when already aligned) -------------
    x_bf = x.astype(jnp.bfloat16)
    if (np_, dp) != (n, d):
        x_bf = jnp.pad(x_bf, ((0, np_ - n), (0, dp - d)))
    bidx = batch_index.astype(jnp.int32)
    if np_ != n:
        # Padded entities get segment id == bp, which matches no one-hot row.
        bidx = jnp.pad(bidx, (0, np_ - n), constant_values=bp)
    bidx = bidx.reshape(1, np_)

    def _pad_w(w):
        w = w if (dp, dp) == (d, d) else jnp.pad(w, ((0, dp - d), (0, dp - d)))
        return w.astype(jnp.bfloat16)

    def _pad_b(b):
        b = b if dp == d else jnp.pad(b, (0, dp - d))
        return b.reshape(1, dp).astype(jnp.float32)

    wpre_p, wproj_p = _pad_w(wpre), _pad_w(wproj)
    bpre_p, bproj_p = _pad_b(bpre), _pad_b(bproj)

    # --- pass 1: per-core partial segment sums/counts ------------------------
    sums, counts = pl.pallas_call(
        _reduce_kernel,
        out_shape=(jax.ShapeDtypeStruct((num_cores, bp, dp), jnp.float32),
                   jax.ShapeDtypeStruct((num_cores, bp, 1), jnp.float32)),
        grid=(num_cores, tiles_per_core),
        in_specs=[
            pl.BlockSpec((1, tn), lambda c, t: (0, c * tiles_per_core + t)),
            pl.BlockSpec((tn, dp), lambda c, t: (c * tiles_per_core + t, 0)),
            pl.BlockSpec((dp, dp), lambda c, t: (0, 0)),    # W_pre resident
        ],
        out_specs=(pl.BlockSpec((1, bp, dp), lambda c, t: (c, 0, 0)),
                   pl.BlockSpec((1, bp, 1), lambda c, t: (c, 0, 0))),
        compiler_params=pltpu.CompilerParams(
            dimension_semantics=("parallel", "arbitrary"),
            vmem_limit_bytes=vmem_limit),
        cost_estimate=pl.CostEstimate(
            flops=2 * np_ * dp * dp + 2 * bp * np_ * dp,
            transcendentals=0,
            bytes_accessed=np_ * dp * 2 + np_ * 4 + dp * dp * 2
                           + num_cores * bp * (dp + 1) * 4),
    )(bidx, x_bf, wpre_p)

    # --- finalize: combine partials + deferred bias + mean + proj -----------
    pooled = pl.pallas_call(
        _finalize_kernel,
        out_shape=jax.ShapeDtypeStruct((bp, dp), jnp.bfloat16),
    )(sums, counts, bpre_p, wproj_p, bproj_p)

    # --- pass 2: gather pooled segment vectors back to entities -------------
    out_dt = x.dtype
    out_p = pl.pallas_call(
        _gather_kernel,
        out_shape=jax.ShapeDtypeStruct((np_, dp), out_dt),
        grid=(num_cores * tiles_per_core,),
        in_specs=[
            pl.BlockSpec((1, tn), lambda i: (0, i)),
            pl.BlockSpec((bp, dp), lambda i: (0, 0)),        # pooled resident
        ],
        out_specs=pl.BlockSpec((tn, dp), lambda i: (i, 0)),
        compiler_params=pltpu.CompilerParams(
            dimension_semantics=("parallel",),
            vmem_limit_bytes=vmem_limit),
        cost_estimate=pl.CostEstimate(
            flops=2 * np_ * bp * dp,
            transcendentals=0,
            bytes_accessed=np_ * 4 + bp * dp * 2
                           + np_ * dp * jnp.dtype(out_dt).itemsize),
    )(bidx, pooled)

    if (np_, dp) == (n, d):
        return out_p
    return out_p[:n, :d]


def init_params(key, d_model):
    """Deterministic init matching torch.nn.Linear: U(-1/sqrt(fan_in), +)."""
    k1, k2, k3, k4 = jax.random.split(key, 4)
    bound = 1.0 / (d_model ** 0.5)
    # Stored transposed relative to torch (shape (in, out)) so kernels do x @ W.
    wpre = jax.random.uniform(k1, (d_model, d_model), jnp.float32, -bound, bound)
    bpre = jax.random.uniform(k2, (d_model,), jnp.float32, -bound, bound)
    wproj = jax.random.uniform(k3, (d_model, d_model), jnp.float32, -bound, bound)
    bproj = jax.random.uniform(k4, (d_model,), jnp.float32, -bound, bound)
    return wpre, bpre, wproj, bproj


def pool_reference(x, batch_index, params, num_segments):
    """Plain-JAX (f32) reference for correctness checking."""
    wpre, bpre, wproj, bproj = params
    h = x @ wpre + bpre
    sums = jax.ops.segment_sum(h, batch_index, num_segments)
    counts = jax.ops.segment_sum(jnp.ones((x.shape[0],), x.dtype),
                                 batch_index, num_segments)
    xmean = sums / jnp.maximum(counts, 1.0)[:, None]
    pooled = xmean @ wproj + bproj
    return pooled[batch_index]


if __name__ == "__main__":
    N, B, D = 16, 4, 64   # entities, segments (batch), d_model
    key = jax.random.PRNGKey(0)
    kp, kx, kb = jax.random.split(key, 3)

    params = init_params(kp, D)
    x = jax.random.normal(kx, (N, D), jnp.float32)
    batch_index = jax.random.randint(kb, (N,), 0, B, dtype=jnp.int32)

    out = pool_forward(x, batch_index, params, B)
    out = jax.block_until_ready(out)

    ref = pool_reference(x, batch_index, params, B)
    assert out.shape == (N, D)
    # bf16 matmul operands (f32 accumulation) -> relaxed tolerance vs f32 ref.
    max_err = float(jnp.max(jnp.abs(out - ref)))
    assert max_err < 5e-2, f"max abs err {max_err}"
    print("KERNEL_OK")
</pallas_src>

<mosaic_0001>
module attributes {stable_mosaic.version = 11 : i64} {
  func.func @_reduce_kernel(%arg0: i32, %arg1: i32, %arg2: memref<1x128xi32, #tpu.memory_space<vmem>>, %arg3: memref<128x128xbf16, #tpu.memory_space<vmem>>, %arg4: memref<128x128xbf16, #tpu.memory_space<vmem>>, %arg5: memref<1x8x128xf32, #tpu.memory_space<vmem>>, %arg6: memref<1x8x1xf32, #tpu.memory_space<vmem>>) attributes {dimension_semantics = [#tpu.dimension_semantics<parallel>, #tpu.dimension_semantics<arbitrary>], iteration_bounds = array<i64: 1, 1>, scalar_prefetch = 0 : i64, scratch_operands = 0 : i64, tpu.core_type = #tpu.core_type<tc>, window_params = [{transform_indices = @transform_0, window_bounds = array<i64: 1, 128>}, {transform_indices = @transform_1, window_bounds = array<i64: 128, 128>}, {pipeline_mode = #tpu.pipeline_mode<synchronous>, transform_indices = @transform_2, window_bounds = array<i64: 128, 128>}, {transform_indices = @transform_3, window_bounds = array<i64: 1, 8, 128>}, {transform_indices = @transform_4, window_bounds = array<i64: 1, 8, 1>}]} {
    %c0_i32 = arith.constant 0 : i32
    %0 = arith.cmpi eq, %arg1, %c0_i32 : i32
    %1 = arith.extui %0 : i1 to i32
    %c0_i32_0 = arith.constant 0 : i32
    %2 = arith.cmpi ne, %1, %c0_i32_0 : i32
    scf.if %2 {
      %cst_20 = arith.constant 0.000000e+00 : f32
      %27 = vector.broadcast %cst_20 : f32 to vector<1x8x128xf32>
      %c0_21 = arith.constant 0 : index
      %c0_22 = arith.constant 0 : index
      %c0_23 = arith.constant 0 : index
      %28 = vector.load %arg5[%c0_21, %c0_22, %c0_23] : memref<1x8x128xf32, #tpu.memory_space<vmem>>, vector<1x8x128xf32>
      tpu.vector_store %arg5[%c0_21, %c0_22, %c0_23], %27 {strides = array<i32>} : memref<1x8x128xf32, #tpu.memory_space<vmem>>, vector<1x8x128xf32>,
      %cst_24 = arith.constant 0.000000e+00 : f32
      %29 = vector.broadcast %cst_24 : f32 to vector<1x8x1xf32>
      %c0_25 = arith.constant 0 : index
      %c0_26 = arith.constant 0 : index
      %c0_27 = arith.constant 0 : index
      %30 = vector.load %arg6[%c0_25, %c0_26, %c0_27] : memref<1x8x1xf32, #tpu.memory_space<vmem>>, vector<1x8x1xf32>
      tpu.vector_store %arg6[%c0_25, %c0_26, %c0_27], %29 {strides = array<i32>} : memref<1x8x1xf32, #tpu.memory_space<vmem>>, vector<1x8x1xf32>,
    } else {
    }
    %c0 = arith.constant 0 : index
    %c0_1 = arith.constant 0 : index
    %3 = vector.load %arg3[%c0, %c0_1] : memref<128x128xbf16, #tpu.memory_space<vmem>>, vector<128x128xbf16>
    %c0_2 = arith.constant 0 : index
    %c0_3 = arith.constant 0 : index
    %4 = vector.load %arg4[%c0_2, %c0_3] : memref<128x128xbf16, #tpu.memory_space<vmem>>, vector<128x128xbf16>
    %cst = arith.constant dense<0.000000e+00> : vector<128x128xf32>
    %5 = tpu.matmul %3, %4, %cst {dimension_numbers = #tpu.dot_dimension_numbers<[1], [0], [0], [1], [0, 0, 1, 1], [], []>} : vector<128x128xbf16>, vector<128x128xbf16>, vector<128x128xf32> -> vector<128x128xf32>
    %6 = tpu.iota {dimensions = array<i32: 0>} : vector<8x128xi32>
    %c0_4 = arith.constant 0 : index
    %c0_5 = arith.constant 0 : index
    %7 = vector.load %arg2[%c0_4, %c0_5] : memref<1x128xi32, #tpu.memory_space<vmem>>, vector<1x128xi32>
    %8 = vector.broadcast %7 : vector<1x128xi32> to vector<8x128xi32>
    %9 = arith.cmpi eq, %6, %8 : vector<8x128xi32>
    %10 = arith.extui %9 : vector<8x128xi1> to vector<8x128xi32>
    %11 = arith.sitofp %10 : vector<8x128xi32> to vector<8x128xf32>
    %12 = arith.truncf %11 : vector<8x128xf32> to vector<8x128xbf16>
    %c0_6 = arith.constant 0 : index
    %c0_7 = arith.constant 0 : index
    %c0_8 = arith.constant 0 : index
    %13 = vector.load %arg5[%c0_6, %c0_7, %c0_8] : memref<1x8x128xf32, #tpu.memory_space<vmem>>, vector<1x8x128xf32>
    %14 = arith.truncf %5 : vector<128x128xf32> to vector<128x128xbf16>
    %cst_9 = arith.constant dense<0.000000e+00> : vector<8x128xf32>
    %15 = tpu.matmul %12, %14, %cst_9 {dimension_numbers = #tpu.dot_dimension_numbers<[1], [0], [0], [1], [0, 0, 1, 1], [], []>} : vector<8x128xbf16>, vector<128x128xbf16>, vector<8x128xf32> -> vector<8x128xf32>
    %16 = vector.shape_cast %15 : vector<8x128xf32> to vector<1x8x128xf32>
    %17 = arith.addf %13, %16 : vector<1x8x128xf32>
    %c0_10 = arith.constant 0 : index
    %c0_11 = arith.constant 0 : index
    %c0_12 = arith.constant 0 : index
    %18 = vector.load %arg5[%c0_10, %c0_11, %c0_12] : memref<1x8x128xf32, #tpu.memory_space<vmem>>, vector<1x8x128xf32>
    tpu.vector_store %arg5[%c0_10, %c0_11, %c0_12], %17 {strides = array<i32>} : memref<1x8x128xf32, #tpu.memory_space<vmem>>, vector<1x8x128xf32>,
    %c0_13 = arith.constant 0 : index
    %c0_14 = arith.constant 0 : index
    %c0_15 = arith.constant 0 : index
    %19 = vector.load %arg6[%c0_13, %c0_14, %c0_15] : memref<1x8x1xf32, #tpu.memory_space<vmem>>, vector<1x8x1xf32>
    %20 = arith.extui %9 : vector<8x128xi1> to vector<8x128xi32>
    %21 = arith.sitofp %20 : vector<8x128xi32> to vector<8x128xf32>
    %cst_16 = arith.constant dense<0.000000e+00> : vector<8xf32>
    %22 = vector.multi_reduction <add>, %21, %cst_16 [1] : vector<8x128xf32> to vector<8xf32>
    %23 = vector.shape_cast %22 : vector<8xf32> to vector<8x1xf32>
    %24 = vector.shape_cast %23 : vector<8x1xf32> to vector<1x8x1xf32>
    %25 = arith.addf %19, %24 : vector<1x8x1xf32>
    %c0_17 = arith.constant 0 : index
    %c0_18 = arith.constant 0 : index
    %c0_19 = arith.constant 0 : index
    %26 = vector.load %arg6[%c0_17, %c0_18, %c0_19] : memref<1x8x1xf32, #tpu.memory_space<vmem>>, vector<1x8x1xf32>
    tpu.vector_store %arg6[%c0_17, %c0_18, %c0_19], %25 {strides = array<i32>} : memref<1x8x1xf32, #tpu.memory_space<vmem>>, vector<1x8x1xf32>,
    return
  }
  func.func @transform_0(%arg0: i32, %arg1: i32) -> (i32, i32) {
    %c1_i32 = arith.constant 1 : i32
    %0 = arith.muli %arg0, %c1_i32 : i32
    %1 = arith.addi %0, %arg1 : i32
    %c0_i32 = arith.constant 0 : i32
    %c0_i32_0 = arith.constant 0 : i32
    return %c0_i32, %1 : i32, i32
  }
  func.func @transform_1(%arg0: i32, %arg1: i32) -> (i32, i32) {
    %c1_i32 = arith.constant 1 : i32
    %0 = arith.muli %arg0, %c1_i32 : i32
    %1 = arith.addi %0, %arg1 : i32
    %c0_i32 = arith.constant 0 : i32
    %c0_i32_0 = arith.constant 0 : i32
    return %1, %c0_i32 : i32, i32
  }
  func.func @transform_2(%arg0: i32, %arg1: i32) -> (i32, i32) {
    %c0_i32 = arith.constant 0 : i32
    %c0_i32_0 = arith.constant 0 : i32
    %c0_i32_1 = arith.constant 0 : i32
    return %c0_i32, %c0_i32_0 : i32, i32
  }
  func.func @transform_3(%arg0: i32, %arg1: i32) -> (i32, i32, i32) {
    %c0_i32 = arith.constant 0 : i32
    %c0_i32_0 = arith.constant 0 : i32
    %c0_i32_1 = arith.constant 0 : i32
    return %arg0, %c0_i32, %c0_i32_0 : i32, i32, i32
  }
  func.func @transform_4(%arg0: i32, %arg1: i32) -> (i32, i32, i32) {
    %c0_i32 = arith.constant 0 : i32
    %c0_i32_0 = arith.constant 0 : i32
    %c0_i32_1 = arith.constant 0 : i32
    return %arg0, %c0_i32, %c0_i32_0 : i32, i32, i32
  }
}

</mosaic_0001>

<bundles_post_ra>
// kernel: tpu_custom_call.1
= control target key start
LH: loop header
LB: loop body
LE: loop exit
PB: predicated region body
PF: predicated region fallthrough
CT: control target
= control target key end

     0   :  { %10 = vsyncpa [#allocation3], 0  ;;  %s653_s0 = inlined_call_operand.hbm [shape: s32[1,128], index: 0, kind: input, shape index: {}]   ;;  %s654_s1 = inlined_call_operand.hbm [shape: bf16[128,128], index: 1, kind: input, shape index: {}]   ;;  %s655_s2 = inlined_call_operand.hbm [shape: bf16[128,128], index: 2, kind: input, shape index: {}]   ;;  %s656_s3 = inlined_call_operand.hbm [shape: f32[1,8,128], index: 3, kind: output, shape index: {0}]   ;;  %s657_s4 = inlined_call_operand.vmem [shape: f32[1,8,1], index: 4, kind: output, shape index: {1}]  }
   0x1   :  { %11 = vsyncpa [#allocation6], 0 }
   0x2   :  { %12 = vsyncpa [#allocation4], 0  ;;  %s595_s15 = smov [#allocation5]  }
   0x3   :  { %s35_s16 = sshll.u32 %s595_s15, 4  ;;  %s36_s16 = int_to_ptr.vmem [resolvable:$true] %s35_s16 }
   0x4   :  { %s517_s17 = scalar_lea.vmem %s36_s16, 1024  ;;  %p522_p1 = scmp.lt.s32.totalorder %s36_s16, %s36_s16 }
   0x5   :  { %p518_p0 = scmp.ne.s32.totalorder %s36_s16, %s517_s17  ;;  %p523_p2 = scmp.lt.s32.totalorder %s517_s17, %s517_s17 }
   0x7   :  { %p524_p3 = por %p523_p2, %p522_p1 }
   0x9   :  { %p525_p4 = pnand %p524_p3, %p518_p0 }
   0xb   :  { %528 = shalt.err (!%p525_p4)
}
   0xc   :  { %s596_s18 = smov 64   ;;  %s597_s19 = smov 4  }
   0xd   :  { %41 = dma.hbm_to_vmem [thread:$0]  %s654_s1, 1024, %s36_s16, [#allocation6], %s596_s18, %s596_s18, %s597_s19  }
   0xe   :  { %s598_s22 = smov [#allocation2]   ;;  %s599_s24 = smov [#allocation7]  }
   0xf   :  { %s22_s23 = sshll.u32 %s598_s22, 4  ;;  %s47_s25 = sshll.u32 %s599_s24, 4  ;;  %s23_s23 = int_to_ptr.vmem [resolvable:$true] %s22_s23  ;;  %s48_s25 = int_to_ptr.vmem [resolvable:$true] %s47_s25 }
  0x10   :  { %s537_s26 = scalar_lea.vmem %s23_s23, 16  ;;  %s541_s27 = scalar_lea.vmem %s23_s23, 32 }
  0x11   :  { %p538_p5 = scmp.ne.s32.totalorder %s23_s23, %s537_s26  ;;  %p542_p6 = scmp.lt.s32.totalorder %s23_s23, %s23_s23 }
  0x12   :  { %p543_p7 = scmp.lt.s32.totalorder %s541_s27, %s537_s26 }
  0x14   :  { %p544_p8 = por %p543_p7, %p542_p6 }
  0x16   :  { %p545_p9 = pnand %p544_p8, %p538_p5 }
  0x18   :  { %548 = shalt.err (!%p545_p9)
}
  0x19   :  { %25 = dma.hbm_to_vmem [thread:$0]  %s653_s0, 16, %s23_s23, [#allocation3]  }
  0x1a   :  { %s557_s30 = scalar_lea.vmem %s48_s25, 1024  ;;  %p562_p11 = scmp.lt.s32.totalorder %s48_s25, %s48_s25 }
  0x1b   :  { %p558_p10 = scmp.ne.s32.totalorder %s48_s25, %s557_s30  ;;  %p563_p12 = scmp.lt.s32.totalorder %s557_s30, %s557_s30 }
  0x1d   :  { %p564_p13 = por %p563_p12, %p562_p11 }
  0x1f   :  { %p565_p0 = pnand %p564_p13, %p558_p10 }
  0x21   :  { %568 = shalt.err (!%p565_p0)
}
  0x22   :  { %53 = dma.hbm_to_vmem [thread:$0]  %s655_s2, 1024, %s48_s25, [#allocation6], %s596_s18, %s596_s18, %s597_s19  }
  0x23   :  { %589 = dma.done.wait [#allocation3], 16  }
  0x24   :  { %590 = vsyncadd [#allocation3], 4294967280 }
  0x25   :  { %591 = dma.done.wait [#allocation6], 2048  }
  0x26   :  { %592 = vsyncadd [#allocation6], 4294965248  ;;  %v493_v0 = vld [vmem:[#allocation7 + $0x38] sm:$0xff]   ;;  %v494_v1 = vld [vmem:[#allocation7 + $0x30] sm:$0xff]   ;;  %v600_v16 = vmov 0.0   ;;  %v299_v17 = vlaneseq  ;;  %vm601_vm0 = vmmov 0  }
  0x27   :  { %432 = vmatprep.subr.bf16.mxu0 %v493_v0  ;;  %v495_v2 = vld [vmem:[#allocation7 + $0x28] sm:$0xff]   ;;  %v496_v3 = vld [vmem:[#allocation7 + $0x20] sm:$0xff]   ;;  %v497_v5 = vld [vmem:[#allocation7 + $0x18] sm:$0xff]   ;;  %464 = vmatprep.subr.bf16.mxu1 %v600_v16  ;;  %v602_v45 = vmov 1.0|1.0   ;;  %vm72_vm3 = vcmask 7168  }
  0x28   :  { %433 = vmatpush3.bf16.msra.mxu0 %v493_v0  ;;  %v501_v4 = vld [vmem:[#allocation5] sm:$0xff]   ;;  %v498_v6 = vld [vmem:[#allocation7 + $0x10] sm:$0xff]   ;;  %v499_v7 = vld [vmem:[#allocation7 + $0x8] sm:$0xff]   ;;  %v300_v18 = vshrl.u32 %v299_v17, 7  ;;  %480 = vmatprep.mubr.msk.bf16.mxu1 %vm601_vm0, %v600_v16  ;;  %73 = vst.msk [vmem:[%s657_s4] sm:$0xff] %vm72_vm3, %v600_v16  ;;  %s603_s10 = smov [#allocation8]  }
  0x29   :  { %434 = vmatprep.subr.bf16.mxu0 %v494_v1  ;;  %448 = vmatprep.mubr.bf16.mxu0 %v501_v4  ;;  %v500_v8 = vld [vmem:[#allocation7] sm:$0xff]   ;;  %v502_v9 = vld [vmem:[#allocation5 + $0x8] sm:$0xff]   ;;  %v503_v10 = vld [vmem:[#allocation5 + $0x10] sm:$0xff]   ;;  %s373_s11 = sshll.u32 %s603_s10, 4  ;;  %s374_s11 = int_to_ptr.vmem [resolvable:$true] %s373_s11 }
  0x2a   :  { %v504_v11 = vld [vmem:[#allocation5 + $0x18] sm:$0xff]   ;;  %v505_v12 = vld [vmem:[#allocation5 + $0x20] sm:$0xff]   ;;  %v506_v13 = vld [vmem:[#allocation5 + $0x28] sm:$0xff]   ;;  %s569_s12 = scalar_lea.vmem %s374_s11, 128  ;;  %p574_p2 = scmp.lt.s32.totalorder %s374_s11, %s374_s11 }
  0x2b   :  { %v507_v14 = vld [vmem:[#allocation5 + $0x30] sm:$0xff]   ;;  %v508_v15 = vld [vmem:[#allocation5 + $0x38] sm:$0xff]   ;;  %p570_p1 = scmp.ne.s32.totalorder %s374_s11, %s569_s12  ;;  %p575_p3 = scmp.lt.s32.totalorder %s569_s12, %s569_s12 }
  0x2c   :  { %435 = vmatpush3.bf16.msra.mxu0 %v494_v1  ;;  %v403_v19 = vld [vmem:[#allocation2] ss:$0 sm:$0xff] }
  0x2d   :  { %436 = vmatprep.subr.bf16.mxu0 %v495_v2  ;;  %vm306_vm1 = vcmp.eq.s32.totalorder %v300_v18, %v403_v19  ;;  %p576_p4 = por %p575_p3, %p574_p2 }
  0x2e   :  { %v404_v20 = vsel %vm306_vm1, 1.0, %v600_v16  ;;  %vm405_vm2 = vmpackc.low %vm306_vm1, %vm306_vm1 }
  0x2f   :  { %362 = vadd.xlane.f32.xlu0 %v404_v20  ;;  %v361_v46 = vld [vmem:[%s657_s4] sm:$0xff]  ;;  %p577_p5 = pnand %p576_p4, %p570_p1 }
  0x30   :  { %437 = vmatpush3.bf16.msra.mxu0 %v495_v2 }
  0x31   :  { %438 = vmatprep.subr.bf16.mxu0 %v496_v3 }
  0x34   :  { %439 = vmatpush3.bf16.msra.mxu0 %v496_v3 }
  0x35   :  { %440 = vmatprep.subr.bf16.mxu0 %v497_v5 }
  0x38   :  { %441 = vmatpush3.bf16.msra.mxu0 %v497_v5 }
  0x39   :  { %442 = vmatprep.subr.bf16.mxu0 %v498_v6 }
  0x3c   :  { %443 = vmatpush3.bf16.msra.mxu0 %v498_v6 }
  0x3d   :  { %444 = vmatprep.subr.bf16.mxu0 %v499_v7 }
  0x40   :  { %445 = vmatpush3.bf16.msra.mxu0 %v499_v7 }
  0x41   :  { %446 = vmatprep.subr.bf16.mxu0 %v500_v8 }
  0x44   :  { %447 = vmatpush3.bf16.msra.mxu0 %v500_v8 }
  0x47   :  { %449 = vmatmul.mubr.bf16.vlgmr.msra.gmra.mxu0 %v502_v9 }
  0x48   :  { %452 = vmatprep.mubr.bf16.mxu0 %v503_v10 }
  0x4f   :  { %453 = vmatmul.mubr.bf16.gmra.mxu0 %v504_v11 }
  0x50   :  { %456 = vmatprep.mubr.bf16.mxu0 %v505_v12 }
  0x57   :  { %457 = vmatmul.mubr.bf16.gmra.mxu0 %v506_v13 }
  0x58   :  { %460 = vmatprep.mubr.bf16.mxu0 %v507_v14 }
  0x5f   :  { %461 = vmatmul.mubr.bf16.gmra.mxu0 %v508_v15 }
  0xb8   :  { %v363_v47 = vpop.xlane.xlu0 %362 }
  0xb9   :  { %v364_v48 = vadd.f32 %v363_v47, %v361_v46 }
  0xbb   :  { %366 = vst.msk [vmem:[%s657_s4] sm:$0xff] %vm72_vm3, %v364_v48 }
 0x107   :  { %v450_v21 = vpop.f32.mrf.mxu0 }
 0x109   :  { %v236_v22 = vpop.f32.mrf.mxu0 }
 0x10b   :  { %v451_v23 = vpop.f32.mrf.mxu0 }
 0x10c   :  { %v312_v43 = vpack.c.bf16 %v451_v23, %v450_v21 }
 0x10d   :  { %v239_v24 = vpop.f32.mrf.mxu0 }
 0x10e   :  { %v311_v44 = vpack.c.bf16 %v239_v24, %v236_v22 }
 0x10f   :  { %v454_v25 = vpop.f32.mrf.mxu0 }
 0x111   :  { %v252_v26 = vpop.f32.mrf.mxu0 }
 0x113   :  { %v455_v27 = vpop.f32.mrf.mxu0 }
 0x114   :  { %v314_v41 = vpack.c.bf16 %v455_v27, %v454_v25 }
 0x115   :  { %v255_v28 = vpop.f32.mrf.mxu0 }
 0x116   :  { %v313_v42 = vpack.c.bf16 %v255_v28, %v252_v26 }
 0x117   :  { %v458_v29 = vpop.f32.mrf.mxu0 }
 0x119   :  { %v268_v30 = vpop.f32.mrf.mxu0 }
 0x11b   :  { %v459_v31 = vpop.f32.mrf.mxu0 }
 0x11c   :  { %v316_v39 = vpack.c.bf16 %v459_v31, %v458_v29 }
 0x11d   :  { %v271_v32 = vpop.f32.mrf.mxu0 }
 0x11e   :  { %v315_v40 = vpack.c.bf16 %v271_v32, %v268_v30 }
 0x11f   :  { %v462_v33 = vpop.f32.mrf.mxu0 }
 0x121   :  { %v284_v34 = vpop.f32.mrf.mxu0 }
 0x123   :  { %v463_v35 = vpop.f32.mrf.mxu0 }
 0x124   :  { %v318_v36 = vpack.c.bf16 %v463_v35, %v462_v33 }
 0x125   :  { %v287_v37 = vpop.f32.mrf.mxu0 }
 0x126   :  { %465 = vmatpush3.bf16.msra.mxu1 %v318_v36  ;;  %v317_v38 = vpack.c.bf16 %v287_v37, %v284_v34 }
 0x127   :  { %466 = vmatprep.subr.bf16.mxu1 %v600_v16 }
 0x12a   :  { %467 = vmatpush3.bf16.msra.mxu1 %v317_v38 }
 0x12b   :  { %468 = vmatprep.subr.bf16.mxu1 %v600_v16 }
 0x12e   :  { %469 = vmatpush3.bf16.msra.mxu1 %v316_v39 }
 0x12f   :  { %470 = vmatprep.subr.bf16.mxu1 %v600_v16 }
 0x132   :  { %471 = vmatpush3.bf16.msra.mxu1 %v315_v40 }
 0x133   :  { %472 = vmatprep.subr.bf16.mxu1 %v600_v16 }
 0x136   :  { %473 = vmatpush3.bf16.msra.mxu1 %v314_v41 }
 0x137   :  { %474 = vmatprep.subr.bf16.mxu1 %v600_v16 }
 0x13a   :  { %475 = vmatpush3.bf16.msra.mxu1 %v313_v42 }
 0x13b   :  { %476 = vmatprep.subr.bf16.mxu1 %v600_v16 }
 0x13e   :  { %477 = vmatpush3.bf16.msra.mxu1 %v312_v43 }
 0x13f   :  { %478 = vmatprep.subr.bf16.mxu1 %v600_v16 }
 0x142   :  { %479 = vmatpush3.bf16.msra.mxu1 %v311_v44 }
 0x145   :  { %481 = vmatmul.mubr.msk.bf16.vlgmr.msra.gmra.mxu1 %vm405_vm2, %v602_v45 }
 0x205   :  { %v353_v49 = vpop.f32.mrf.mxu1 }
 0x206   :  { %360 = vst [vmem:[#allocation8] sm:$0xff] %v353_v49 }
 0x207   :  { %v482_v50 = vpop.f32.mrf.mxu1 }
 0x209   :  { %v356_v51 = vpop.f32.mrf.mxu1 }
 0x20a   :  { %580 = shalt.err (!%p577_p5)
}
 0x20b   :  { %376 = dma.vmem_to_hbm [thread:$0]  %s374_s11, 128, %s656_s3, [#allocation4]   ;;  %v483_v52 = vpop.f32.mrf.mxu1 }
 0x20c   :  { %593 = dma.done.wait [#allocation4], 128  }
 0x20d   :  { %594 = vsyncadd [#allocation4], 4294967168 }
 0x20e   :  { %384 = vsyncpa [#allocation3], 1 }
 0x20f   :  { %385 = vsyncpa [#allocation6], 1 }
 0x210   :  { %386 = vsyncpa [#allocation4], 1 }

</bundles_post_ra>
